<compile_context>
chip_gen: v5e
topology: v5e:2x2
jax: 0.10.0
libtpu: 0.0.40
codegen_flags: <defaults>
</compile_context>

<pallas_src>
import functools

import jax
import jax.numpy as jnp
from jax import lax
from jax.experimental import pallas as pl
from jax.experimental.pallas import tpu as pltpu


def _round_up(x, m):
    return (x + m - 1) // m * m


def _tpu_caps():
    """(physical VMEM bytes, has-two-TensorCores?) with safe fallbacks."""
    vmem_cap = None
    two_tc = False
    try:
        info = pltpu.get_tpu_info()
        vmem_cap = int(getattr(info, "vmem_capacity_bytes"))
    except Exception:
        vmem_cap = None
    try:
        kind = jax.devices()[0].device_kind.lower()
        if ("v7" in kind) or ("7x" in kind):
            two_tc = True
        if vmem_cap is None:
            vmem_cap = (64 << 20) if two_tc else (128 << 20)
    except Exception:
        pass
    if vmem_cap is None:
        vmem_cap = 64 << 20   # conservative (v7x-sized) default
    return vmem_cap, two_tc


def _pow_sum(x, y, p_exp):
    """x**p + y**p, using VPU multiplies for integer exponents."""
    if isinstance(p_exp, float) and p_exp.is_integer():
        p_exp = int(p_exp)
    if isinstance(p_exp, int) and not isinstance(p_exp, bool):
        if p_exp == 1:
            return x + y
        if p_exp == 2:
            return x * x + y * y
        return lax.integer_pow(x, p_exp) + lax.integer_pow(y, p_exp)
    # non-integer exponent: matches the jnp/torch reference semantics
    return jnp.power(x, p_exp) + jnp.power(y, p_exp)


def _dice_kernel(p_ref, t_ref, num_ref, den_ref, *,
                 rows_total, rows_tile, tiles_per_split, needs_mask, p_exp):
    s = pl.program_id(0)   # parallel split (second TensorCore on v7x)
    r = pl.program_id(1)   # reduction step within the split

    @pl.when(r == 0)
    def _():
        num_ref[...] = jnp.zeros_like(num_ref)
        den_ref[...] = jnp.zeros_like(den_ref)

    def contributions():
        p = p_ref[...].astype(jnp.float32)   # (B, rows_tile, 128)
        t = t_ref[...].astype(jnp.float32)
        return p * t, _pow_sum(p, t, p_exp)

    def accumulate(pt, pw):
        b = pt.shape[0]
        # Fold (B, rows_tile, 128) -> (B, 8, 128): pure vreg adds, no XLU,
        # no narrow masked stores in the hot loop.
        num_ref[...] += jnp.sum(pt.reshape(b, rows_tile // 8, 8, 128), axis=1)
        den_ref[...] += jnp.sum(pw.reshape(b, rows_tile // 8, 8, 128), axis=1)

    if needs_mask:
        # Only the single ragged final block pays the mask; every other
        # iteration takes the unmasked fast path.
        start = (s * tiles_per_split + r) * rows_tile
        is_full = start + rows_tile <= rows_total

        @pl.when(is_full)
        def _():
            pt, pw = contributions()
            accumulate(pt, pw)

        @pl.when(jnp.logical_not(is_full))
        def _():
            pt, pw = contributions()
            valid = rows_total - start           # 0 < valid < rows_tile
            row_id = lax.broadcasted_iota(jnp.int32, (1, rows_tile, 128), 1)
            keep = row_id < valid
            # where() after the multiplies so garbage (even NaN) in the
            # out-of-bounds tail never reaches the accumulators.
            accumulate(jnp.where(keep, pt, 0.0), jnp.where(keep, pw, 0.0))
    else:
        pt, pw = contributions()
        accumulate(pt, pw)


def binary_dice_loss(predict, target, smooth=1e-6, p=2, reduction="mean",
                     rows_tile=None, num_splits=None, target_block_bytes=None):
    assert predict.shape[0] == target.shape[0], (
        f"predict {predict.shape[0]} & target {target.shape[0]} "
        "batch size don't match"
    )
    vmem_cap, two_tc = _tpu_caps()

    B = predict.shape[0]
    pred_flat = predict.reshape(B, -1)
    targ_flat = target.reshape(B, -1)
    N = pred_flat.shape[1]

    # Lay each batch row out as (R, 128).  Only pad if N is not already a
    # multiple of 8*128 (rare for CHW image data) -- the common case does no
    # HBM padding copy at all.
    n_pad = _round_up(N, 8 * 128)
    if n_pad != N:
        # zero padding only leaves the sums unchanged for p > 0
        assert p > 0, "zero-padding the feature axis requires p > 0"
        pad = ((0, 0), (0, n_pad - N))
        pred_flat = jnp.pad(pred_flat, pad)
        targ_flat = jnp.pad(targ_flat, pad)
    R = n_pad // 128
    pred3 = pred_flat.reshape(B, R, 128)
    targ3 = targ_flat.reshape(B, R, 128)

    p_item = pred3.dtype.itemsize
    t_item = targ3.dtype.itemsize

    # Native sublane packing for the narrowest input dtype (8 rows for f32,
    # 16 for bf16/fp16, 32 for 8-bit).
    pack = max(8, 32 // min(p_item, t_item))
    if R < pack:
        pack = 8  # tiny inputs: fall back to 8-row granularity

    # VMEM accounting per row of the block:
    #   * 2 inputs x 2 pipeline buffers of raw input bytes
    #   * in-body f32 temporaries: p, t upcasts + pt + pw  (~4x f32 block)
    pipeline_per_row = 2 * B * 128 * (p_item + t_item)
    temps_per_row = 4 * B * 128 * 4
    per_row = pipeline_per_row + temps_per_row
    acc_bytes = 2 * 2 * B * 8 * 128 * 4          # double-buffered f32 accums

    # Generation-aware block sizing: bigger blocks on 128-MiB-VMEM chips.
    if target_block_bytes is None:
        target_block_bytes = (8 << 20) if vmem_cap >= (96 << 20) else (3 << 20)

    budget = int(0.70 * vmem_cap)
    rows_budget = max(8, (budget - acc_bytes) // per_row)
    if rows_tile is None:
        rows_tile = max(pack,
                        target_block_bytes // (B * 128 * max(p_item, t_item)))
    rows_tile = min(rows_tile, rows_budget, R)
    rows_tile = max(pack, (rows_tile // pack) * pack)
    rows_tile = min(rows_tile, max(R, 8))

    n_tiles = pl.cdiv(R, rows_tile)

    # num_splits: 2 only on 2-TensorCore chips (v7x), 1 elsewhere, and always
    # an exact divisor of n_tiles so there are no clamped dead iterations.
    if num_splits is None:
        num_splits = 2 if two_tc else 1
    num_splits = max(1, min(int(num_splits), n_tiles))
    while n_tiles % num_splits != 0:
        num_splits -= 1
    tiles_per_split = n_tiles // num_splits

    needs_mask = (n_tiles * rows_tile) != R

    def in_map(s, r):
        return (0, s * tiles_per_split + r, 0)

    def out_map(s, r):
        return (s, 0, 0, 0)

    kernel = functools.partial(
        _dice_kernel,
        rows_total=R, rows_tile=rows_tile, tiles_per_split=tiles_per_split,
        needs_mask=needs_mask, p_exp=p)

    # Explicit VMEM limit: pipeline buffers + f32 temporaries + accumulators,
    # clamped to the chip's physical VMEM (not a fixed cap).
    est_total = rows_tile * per_row + acc_bytes + (6 << 20)
    vmem_limit = int(min(int(0.85 * vmem_cap), max(32 << 20, est_total)))

    num_part, den_part = pl.pallas_call(
        kernel,
        out_shape=(
            jax.ShapeDtypeStruct((num_splits, B, 8, 128), jnp.float32),
            jax.ShapeDtypeStruct((num_splits, B, 8, 128), jnp.float32),
        ),
        grid_spec=pltpu.PrefetchScalarGridSpec(
            num_scalar_prefetch=0,
            grid=(num_splits, tiles_per_split),
            in_specs=[
                pl.BlockSpec((B, rows_tile, 128), in_map),
                pl.BlockSpec((B, rows_tile, 128), in_map),
            ],
            out_specs=(
                pl.BlockSpec((None, B, 8, 128), out_map),
                pl.BlockSpec((None, B, 8, 128), out_map),
            ),
        ),
        compiler_params=pltpu.CompilerParams(
            # TODO(synk): if plain "parallel" doesn't shard axis 0 across the
            # two v7x TensorCores in this Mosaic version, switch to
            # pltpu.CORE_PARALLEL for that axis.
            dimension_semantics=("parallel", "arbitrary"),
            vmem_limit_bytes=vmem_limit,
        ),
    )(pred3, targ3)

    # Tiny epilogue in plain JAX: combine per-split / per-vreg partial sums.
    num = 2.0 * jnp.sum(num_part, axis=(0, 2, 3)) + smooth
    den = jnp.sum(den_part, axis=(0, 2, 3)) + smooth
    loss = 1.0 - num / den

    if reduction == "mean":
        return jnp.mean(loss)
    elif reduction == "sum":
        return jnp.sum(loss)
    elif reduction == "none":
        return loss
    else:
        raise Exception("Unexpected reduction {}".format(reduction))


def _reference(predict, target, smooth=1e-6, p=2, reduction="mean"):
    B = predict.shape[0]
    pr = predict.reshape(B, -1).astype(jnp.float32)
    tg = target.reshape(B, -1).astype(jnp.float32)
    num = 2.0 * jnp.sum(pr * tg, axis=1) + smooth
    den = jnp.sum(jnp.power(pr, p) + jnp.power(tg, p), axis=1) + smooth
    loss = 1.0 - num / den
    if reduction == "mean":
        return jnp.mean(loss)
    elif reduction == "sum":
        return jnp.sum(loss)
    return loss


if __name__ == "__main__":
    key = jax.random.PRNGKey(0)
    kp, kt, kp2, kt2 = jax.random.split(key, 4)

    # --- test 1: the spec's shape, f32, mean reduction (fast path) ---------
    B, C, H, W = 2, 4, 16, 16
    predict = jax.nn.sigmoid(
        jax.random.normal(kp, (B, C, H, W), dtype=jnp.float32))
    target = (jax.random.uniform(kt, (B, C, H, W), dtype=jnp.float32)
              > 0.5).astype(jnp.float32)

    out = binary_dice_loss(predict, target)
    jax.block_until_ready(out)
    ref = _reference(predict, target)
    assert jnp.allclose(out, ref, rtol=1e-5, atol=1e-6), (out, ref)

    out_none = binary_dice_loss(predict, target, reduction="none")
    ref_none = _reference(predict, target, reduction="none")
    jax.block_until_ready(out_none)
    assert jnp.allclose(out_none, ref_none, rtol=1e-5, atol=1e-6)

    # --- test 2: ragged final block (exercises the gated mask path) --------
    B2, C2, H2, W2 = 2, 3, 32, 32          # N = 3072 -> R = 24
    predict2 = jax.nn.sigmoid(
        jax.random.normal(kp2, (B2, C2, H2, W2), dtype=jnp.float32))
    target2 = (jax.random.uniform(kt2, (B2, C2, H2, W2), dtype=jnp.float32)
               > 0.5).astype(jnp.float32)
    out2 = binary_dice_loss(predict2, target2, rows_tile=16, num_splits=1)
    jax.block_until_ready(out2)
    ref2 = _reference(predict2, target2)
    assert jnp.allclose(out2, ref2, rtol=1e-5, atol=1e-6), (out2, ref2)

    # --- test 3: bf16 inputs (halved HBM bytes; f32 accumulation) ----------
    out3 = binary_dice_loss(predict.astype(jnp.bfloat16),
                            target.astype(jnp.bfloat16))
    jax.block_until_ready(out3)
    ref3 = _reference(predict.astype(jnp.bfloat16),
                      target.astype(jnp.bfloat16))
    assert jnp.allclose(out3, ref3, rtol=1e-4, atol=1e-5), (out3, ref3)

    print("KERNEL_OK")
</pallas_src>

<mosaic_0001>
module attributes {stable_mosaic.version = 11 : i64} {
  func.func @_dice_kernel(%arg0: i32, %arg1: i32, %arg2: memref<2x8x128xf32, #tpu.memory_space<vmem>>, %arg3: memref<2x8x128xf32, #tpu.memory_space<vmem>>, %arg4: memref<1x2x8x128xf32, #tpu.memory_space<vmem>>, %arg5: memref<1x2x8x128xf32, #tpu.memory_space<vmem>>) attributes {dimension_semantics = [#tpu.dimension_semantics<parallel>, #tpu.dimension_semantics<arbitrary>], iteration_bounds = array<i64: 1, 1>, scalar_prefetch = 0 : i64, scratch_operands = 0 : i64, tpu.core_type = #tpu.core_type<tc>, window_params = [{transform_indices = @transform_0, window_bounds = array<i64: 2, 8, 128>}, {transform_indices = @transform_1, window_bounds = array<i64: 2, 8, 128>}, {transform_indices = @transform_2, window_bounds = array<i64: 1, 2, 8, 128>}, {transform_indices = @transform_3, window_bounds = array<i64: 1, 2, 8, 128>}]} {
    %c0_i32 = arith.constant 0 : i32
    %0 = arith.cmpi eq, %arg1, %c0_i32 : i32
    %1 = arith.extui %0 : i1 to i32
    %c0_i32_0 = arith.constant 0 : i32
    %2 = arith.cmpi ne, %1, %c0_i32_0 : i32
    scf.if %2 {
      %cst_23 = arith.constant 0.000000e+00 : f32
      %25 = vector.broadcast %cst_23 : f32 to vector<2x8x128xf32>
      %c0_24 = arith.constant 0 : index
      %c0_25 = arith.constant 0 : index
      %c0_26 = arith.constant 0 : index
      %c0_27 = arith.constant 0 : index
      %26 = vector.load %arg4[%c0_24, %c0_25, %c0_26, %c0_27] : memref<1x2x8x128xf32, #tpu.memory_space<vmem>>, vector<1x2x8x128xf32>
      %27 = vector.shape_cast %26 : vector<1x2x8x128xf32> to vector<2x8x128xf32>
      %28 = vector.shape_cast %25 : vector<2x8x128xf32> to vector<1x2x8x128xf32>
      tpu.vector_store %arg4[%c0_24, %c0_25, %c0_26, %c0_27], %28 {strides = array<i32>} : memref<1x2x8x128xf32, #tpu.memory_space<vmem>>, vector<1x2x8x128xf32>,
      %cst_28 = arith.constant 0.000000e+00 : f32
      %29 = vector.broadcast %cst_28 : f32 to vector<2x8x128xf32>
      %c0_29 = arith.constant 0 : index
      %c0_30 = arith.constant 0 : index
      %c0_31 = arith.constant 0 : index
      %c0_32 = arith.constant 0 : index
      %30 = vector.load %arg5[%c0_29, %c0_30, %c0_31, %c0_32] : memref<1x2x8x128xf32, #tpu.memory_space<vmem>>, vector<1x2x8x128xf32>
      %31 = vector.shape_cast %30 : vector<1x2x8x128xf32> to vector<2x8x128xf32>
      %32 = vector.shape_cast %29 : vector<2x8x128xf32> to vector<1x2x8x128xf32>
      tpu.vector_store %arg5[%c0_29, %c0_30, %c0_31, %c0_32], %32 {strides = array<i32>} : memref<1x2x8x128xf32, #tpu.memory_space<vmem>>, vector<1x2x8x128xf32>,
    } else {
    }
    %c0 = arith.constant 0 : index
    %c0_1 = arith.constant 0 : index
    %c0_2 = arith.constant 0 : index
    %3 = vector.load %arg2[%c0, %c0_1, %c0_2] : memref<2x8x128xf32, #tpu.memory_space<vmem>>, vector<2x8x128xf32>
    %c0_3 = arith.constant 0 : index
    %c0_4 = arith.constant 0 : index
    %c0_5 = arith.constant 0 : index
    %4 = vector.load %arg3[%c0_3, %c0_4, %c0_5] : memref<2x8x128xf32, #tpu.memory_space<vmem>>, vector<2x8x128xf32>
    %5 = arith.mulf %3, %4 : vector<2x8x128xf32>
    %6 = arith.mulf %3, %3 : vector<2x8x128xf32>
    %7 = arith.mulf %4, %4 : vector<2x8x128xf32>
    %8 = arith.addf %6, %7 : vector<2x8x128xf32>
    %c0_6 = arith.constant 0 : index
    %c0_7 = arith.constant 0 : index
    %c0_8 = arith.constant 0 : index
    %c0_9 = arith.constant 0 : index
    %9 = vector.load %arg4[%c0_6, %c0_7, %c0_8, %c0_9] : memref<1x2x8x128xf32, #tpu.memory_space<vmem>>, vector<1x2x8x128xf32>
    %10 = vector.shape_cast %9 : vector<1x2x8x128xf32> to vector<2x8x128xf32>
    %11 = vector.shape_cast %5 : vector<2x8x128xf32> to vector<2x1x8x128xf32>
    %cst = arith.constant dense<0.000000e+00> : vector<2x8x128xf32>
    %12 = vector.multi_reduction <add>, %11, %cst [1] : vector<2x1x8x128xf32> to vector<2x8x128xf32>
    %13 = arith.addf %10, %12 : vector<2x8x128xf32>
    %c0_10 = arith.constant 0 : index
    %c0_11 = arith.constant 0 : index
    %c0_12 = arith.constant 0 : index
    %c0_13 = arith.constant 0 : index
    %14 = vector.load %arg4[%c0_10, %c0_11, %c0_12, %c0_13] : memref<1x2x8x128xf32, #tpu.memory_space<vmem>>, vector<1x2x8x128xf32>
    %15 = vector.shape_cast %14 : vector<1x2x8x128xf32> to vector<2x8x128xf32>
    %16 = vector.shape_cast %13 : vector<2x8x128xf32> to vector<1x2x8x128xf32>
    tpu.vector_store %arg4[%c0_10, %c0_11, %c0_12, %c0_13], %16 {strides = array<i32>} : memref<1x2x8x128xf32, #tpu.memory_space<vmem>>, vector<1x2x8x128xf32>,
    %c0_14 = arith.constant 0 : index
    %c0_15 = arith.constant 0 : index
    %c0_16 = arith.constant 0 : index
    %c0_17 = arith.constant 0 : index
    %17 = vector.load %arg5[%c0_14, %c0_15, %c0_16, %c0_17] : memref<1x2x8x128xf32, #tpu.memory_space<vmem>>, vector<1x2x8x128xf32>
    %18 = vector.shape_cast %17 : vector<1x2x8x128xf32> to vector<2x8x128xf32>
    %19 = vector.shape_cast %8 : vector<2x8x128xf32> to vector<2x1x8x128xf32>
    %cst_18 = arith.constant dense<0.000000e+00> : vector<2x8x128xf32>
    %20 = vector.multi_reduction <add>, %19, %cst_18 [1] : vector<2x1x8x128xf32> to vector<2x8x128xf32>
    %21 = arith.addf %18, %20 : vector<2x8x128xf32>
    %c0_19 = arith.constant 0 : index
    %c0_20 = arith.constant 0 : index
    %c0_21 = arith.constant 0 : index
    %c0_22 = arith.constant 0 : index
    %22 = vector.load %arg5[%c0_19, %c0_20, %c0_21, %c0_22] : memref<1x2x8x128xf32, #tpu.memory_space<vmem>>, vector<1x2x8x128xf32>
    %23 = vector.shape_cast %22 : vector<1x2x8x128xf32> to vector<2x8x128xf32>
    %24 = vector.shape_cast %21 : vector<2x8x128xf32> to vector<1x2x8x128xf32>
    tpu.vector_store %arg5[%c0_19, %c0_20, %c0_21, %c0_22], %24 {strides = array<i32>} : memref<1x2x8x128xf32, #tpu.memory_space<vmem>>, vector<1x2x8x128xf32>,
    return
  }
  func.func @transform_0(%arg0: i32, %arg1: i32) -> (i32, i32, i32) {
    %c1_i32 = arith.constant 1 : i32
    %0 = arith.muli %arg0, %c1_i32 : i32
    %1 = arith.addi %0, %arg1 : i32
    %c0_i32 = arith.constant 0 : i32
    %c0_i32_0 = arith.constant 0 : i32
    %c0_i32_1 = arith.constant 0 : i32
    return %c0_i32, %1, %c0_i32_0 : i32, i32, i32
  }
  func.func @transform_1(%arg0: i32, %arg1: i32) -> (i32, i32, i32) {
    %c1_i32 = arith.constant 1 : i32
    %0 = arith.muli %arg0, %c1_i32 : i32
    %1 = arith.addi %0, %arg1 : i32
    %c0_i32 = arith.constant 0 : i32
    %c0_i32_0 = arith.constant 0 : i32
    %c0_i32_1 = arith.constant 0 : i32
    return %c0_i32, %1, %c0_i32_0 : i32, i32, i32
  }
  func.func @transform_2(%arg0: i32, %arg1: i32) -> (i32, i32, i32, i32) {
    %c0_i32 = arith.constant 0 : i32
    %c0_i32_0 = arith.constant 0 : i32
    %c0_i32_1 = arith.constant 0 : i32
    %c0_i32_2 = arith.constant 0 : i32
    return %arg0, %c0_i32, %c0_i32_0, %c0_i32_1 : i32, i32, i32, i32
  }
  func.func @transform_3(%arg0: i32, %arg1: i32) -> (i32, i32, i32, i32) {
    %c0_i32 = arith.constant 0 : i32
    %c0_i32_0 = arith.constant 0 : i32
    %c0_i32_1 = arith.constant 0 : i32
    %c0_i32_2 = arith.constant 0 : i32
    return %arg0, %c0_i32, %c0_i32_0, %c0_i32_1 : i32, i32, i32, i32
  }
}

</mosaic_0001>

<bundles_post_ra>
// kernel: tpu_custom_call.1
= control target key start
LH: loop header
LB: loop body
LE: loop exit
PB: predicated region body
PF: predicated region fallthrough
CT: control target
= control target key end

     0   :  { %9 = vsyncpa [#allocation3], 0  ;;  %s290_s0 = inlined_call_operand.hbm [shape: f32[2,8,128], index: 0, kind: input, shape index: {}]   ;;  %s291_s1 = inlined_call_operand.hbm [shape: f32[2,8,128], index: 1, kind: input, shape index: {}]   ;;  %s292_s2 = inlined_call_operand.hbm [shape: f32[1,2,8,128], index: 2, kind: output, shape index: {0}]   ;;  %s293_s3 = inlined_call_operand.hbm [shape: f32[1,2,8,128], index: 3, kind: output, shape index: {1}]  }
   0x1   :  { %10 = vsyncpa [#allocation6], 0 }
   0x2   :  { %11 = vsyncpa [#allocation4], 0 }
   0x3   :  { %12 = vsyncpa [#allocation9], 0  ;;  %s20_s14 = sshll.u32 %s290_s0, 4  ;;  %s240_s15 = smov [#allocation2]   ;;  %s21_s14 = int_to_ptr.hbm [resolvable:$true] %s20_s14 }
   0x4   :  { %s22_s16 = sshll.u32 %s240_s15, 4  ;;  %s36_s19 = sshll.u32 %s291_s1, 4  ;;  %s23_s16 = int_to_ptr.vmem [resolvable:$true] %s22_s16  ;;  %s37_s19 = int_to_ptr.hbm [resolvable:$true] %s36_s19 }
   0x5   :  { %s241_s20 = smov 128   ;;  %s242_s21 = smov 8  }
   0x6   :  { %28 = dma.hbm_to_vmem [thread:$0]  %s21_s14, 256, %s23_s16, [#allocation3], %s241_s20, %s241_s20, %s242_s21  }
   0x7   :  { %s243_s22 = smov [#allocation5]  }
   0x8   :  { %s38_s23 = sshll.u32 %s243_s22, 4  ;;  %s39_s23 = int_to_ptr.vmem [resolvable:$true] %s38_s23 }
   0x9   :  { %44 = dma.hbm_to_vmem [thread:$0]  %s37_s19, 256, %s39_s23, [#allocation6], %s241_s20, %s241_s20, %s242_s21  }
   0xa   :  { %232 = dma.done.wait [#allocation3], 256  }
   0xb   :  { %233 = vsyncadd [#allocation3], 4294967040 }
   0xc   :  { %234 = dma.done.wait [#allocation6], 256  }
   0xd   :  { %235 = vsyncadd [#allocation6], 4294967040  ;;  %v63_v0 = vld [vmem:[#allocation2] sm:$0xff]  ;;  %v65_v1 = vld [vmem:[#allocation5] sm:$0xff]  ;;  %s244_s0 = smov [#allocation7]   ;;  %s97_s26 = sshll.u32 %s292_s2, 4  ;;  %s98_s26 = int_to_ptr.hbm [resolvable:$true] %s97_s26 }
   0xe   :  { %v64_v2 = vld [vmem:[#allocation2 + $0x8] sm:$0xff]  ;;  %v67_v3 = vmul.f32 %v65_v1, %v63_v0  ;;  %v66_v4 = vld [vmem:[#allocation5 + $0x8] sm:$0xff]  ;;  %v69_v5 = vmul.f32 %v63_v0, %v63_v0  ;;  %v71_v6 = vmul.f32 %v65_v1, %v65_v1  ;;  %s95_s1 = sshll.u32 %s244_s0, 4  ;;  %s245_s27 = smov [#allocation8]   ;;  %s96_s1 = int_to_ptr.vmem [resolvable:$true] %s95_s1 }
   0xf   :  { %v70_v7 = vmul.f32 %v64_v2, %v64_v2  ;;  %v68_v8 = vmul.f32 %v66_v4, %v64_v2  ;;  %v72_v9 = vmul.f32 %v66_v4, %v66_v4  ;;  %s108_s28 = sshll.u32 %s245_s27, 4  ;;  %s110_s4 = sshll.u32 %s293_s3, 4  ;;  %s109_s28 = int_to_ptr.vmem [resolvable:$true] %s108_s28  ;;  %s111_s4 = int_to_ptr.hbm [resolvable:$true] %s110_s4 }
  0x10   :  { %v73_v10 = vadd.f32 %v71_v6, %v69_v5  ;;  %81 = vst [vmem:[#allocation7] sm:$0xff] %v67_v3 }
  0x11   :  { %v74_v11 = vadd.f32 %v72_v9, %v70_v7  ;;  %82 = vst [vmem:[#allocation7 + $0x8] sm:$0xff] %v68_v8 }
  0x12   :  { %89 = vst [vmem:[#allocation8] sm:$0xff] %v73_v10  ;;  %103 = dma.vmem_to_hbm [thread:$0]  %s96_s1, 256, %s98_s26, [#allocation4], %s241_s20, %s241_s20, %s242_s21  }
  0x13   :  { %90 = vst [vmem:[#allocation8 + $0x8] sm:$0xff] %v74_v11 }
  0x14   :  { %116 = dma.vmem_to_hbm [thread:$0]  %s109_s28, 256, %s111_s4, [#allocation9], %s241_s20, %s241_s20, %s242_s21  }
  0x15   :  { %236 = dma.done.wait [#allocation4], 256  }
  0x16   :  { %237 = vsyncadd [#allocation4], 4294967040 }
  0x17   :  { %238 = dma.done.wait [#allocation9], 256  }
  0x18   :  { %239 = vsyncadd [#allocation9], 4294967040 }
  0x19   :  { %125 = vsyncpa [#allocation3], 1 }
  0x1a   :  { %126 = vsyncpa [#allocation6], 1 }
  0x1b   :  { %127 = vsyncpa [#allocation4], 1 }
  0x1c   :  { %128 = vsyncpa [#allocation9], 1 }

</bundles_post_ra>
